<compile_context>
chip_gen: v5e
topology: v5e:2x2
jax: 0.10.0
libtpu: 0.0.40
codegen_flags: <defaults>
</compile_context>

<pallas_src>
import jax
import jax.numpy as jnp
from jax.experimental import pallas as pl
from jax.experimental.pallas import tpu as pltpu

EPS = 1e-5
TB = 128  # batch tile: multiple of 8 (f32 sublanes) and of 128 (lane-dense output)


def _mlp_kernel(x1_ref, x2_ref, w0a_ref, w0b_ref, b0_ref,
                w1_ref, b1_ref, w2row_ref, b2_ref, out_ref):
    # --- block 0: concat-free Linear ([x1|x2] @ w0) -> ReLU. (BN0 folded into w1/b1) ---
    h = jnp.dot(x1_ref[...], w0a_ref[...], preferred_element_type=jnp.float32)
    h = h + jnp.dot(x2_ref[...], w0b_ref[...], preferred_element_type=jnp.float32)
    h = jnp.maximum(h + b0_ref[...], 0.0)

    # --- block 1: Linear (BN0 pre-folded) -> ReLU. (BN1 folded into w2/b2) ---
    h = jnp.dot(h, w1_ref[...], preferred_element_type=jnp.float32) + b1_ref[...]
    h = jnp.maximum(h, 0.0)

    # --- head: Linear(prev, 1) + Sigmoid, as (1,prev) x (TB,prev)^T -> lane-dense (1,TB) ---
    logits = jax.lax.dot_general(
        w2row_ref[...], h,
        dimension_numbers=(((1,), (1,)), ((), ())),
        preferred_element_type=jnp.float32) + b2_ref[0, 0]
    out_ref[...] = jax.nn.sigmoid(logits)


def fold_params(params):
    """One-time inference-mode prep: split w0 for the concat-free first layer and
    fold each BatchNorm1d (eval) into the following Linear layer."""
    E2 = params["w0"].shape[0]
    E = E2 // 2
    s0 = params["g0"] * jax.lax.rsqrt(params["rv0"] + EPS)            # (1, H0)
    s1 = params["g1"] * jax.lax.rsqrt(params["rv1"] + EPS)            # (1, H1)
    w1f = params["w1"] * s0.reshape(-1, 1)                            # (H0, H1)
    b1f = params["b1"] + (params["be0"] - params["rm0"] * s0) @ params["w1"]
    w2f = params["w2"] * s1.reshape(-1, 1)                            # (H1, 1)
    b2f = params["b2"] + (params["be1"] - params["rm1"] * s1) @ params["w2"]
    return {
        "w0a": params["w0"][:E],          # (E, H0)
        "w0b": params["w0"][E:],          # (E, H0)
        "b0": params["b0"],               # (1, H0)
        "w1": w1f,                        # (H0, H1)  BN0 folded
        "b1": b1f,                        # (1, H1)
        "w2row": w2f.reshape(1, -1),      # (1, H1)   BN1 folded
        "b2": b2f,                        # (1, 1)
    }


@jax.jit
def playlist_recommender_forward(x1, x2, folded):
    """x1, x2: (B, E) float32. folded: output of fold_params."""
    B, E = x1.shape
    H0 = folded["w0a"].shape[1]
    H1 = folded["w1"].shape[1]

    G = pl.cdiv(B, TB)
    B_pad = G * TB
    if B_pad != B:
        pad = B_pad - B
        x1 = jnp.pad(x1, ((0, pad), (0, 0)))
        x2 = jnp.pad(x2, ((0, pad), (0, 0)))

    flops = 2 * B_pad * (2 * E * H0 + H0 * H1 + H1)
    bytes_accessed = 4 * (2 * B_pad * E + 2 * E * H0 + H0
                          + H0 * H1 + H1 + H1 + 1 + B_pad)

    out = pl.pallas_call(
        _mlp_kernel,
        out_shape=jax.ShapeDtypeStruct((G, 1, TB), jnp.float32),
        grid=(G,),
        in_specs=[
            pl.BlockSpec((TB, E), lambda i: (i, 0)),            # x1 batch tile
            pl.BlockSpec((TB, E), lambda i: (i, 0)),            # x2 batch tile
            pl.BlockSpec((E, H0), lambda i: (0, 0)),            # w0a (VMEM-resident)
            pl.BlockSpec((E, H0), lambda i: (0, 0)),            # w0b (VMEM-resident)
            pl.BlockSpec((1, H0), lambda i: (0, 0)),            # b0
            pl.BlockSpec((H0, H1), lambda i: (0, 0)),           # w1 (BN0 folded)
            pl.BlockSpec((1, H1), lambda i: (0, 0)),            # b1 (BN0 folded)
            pl.BlockSpec((1, H1), lambda i: (0, 0)),            # w2 row (BN1 folded)
            pl.BlockSpec(memory_space=pltpu.MemorySpace.SMEM),  # b2 scalar
        ],
        out_specs=pl.BlockSpec((None, 1, TB), lambda i: (i, 0, 0)),
        compiler_params=pltpu.CompilerParams(
            dimension_semantics=("parallel",),
            vmem_limit_bytes=32 * 1024 * 1024),
        cost_estimate=pl.CostEstimate(
            flops=flops, transcendentals=B_pad, bytes_accessed=bytes_accessed),
    )(x1, x2,
      folded["w0a"], folded["w0b"], folded["b0"],
      folded["w1"], folded["b1"], folded["w2row"], folded["b2"])

    # (G, 1, TB) lane-dense blocks -> (B, 1)
    return out.reshape(B_pad, 1)[:B]


def init_params(key, embedding_dim, hidden_dims):
    """PyTorch-style init. Linear weights stored as (in, out). BN stats randomized
    (as if trained) so the folding path is exercised numerically."""
    params = {}
    prev = embedding_dim * 2
    dims = list(hidden_dims)
    keys = jax.random.split(key, 6 * len(dims) + 2)
    ki = 0
    for idx, dim in enumerate(dims):
        bound = 1.0 / jnp.sqrt(prev)
        params[f"w{idx}"] = jax.random.uniform(
            keys[ki], (prev, dim), jnp.float32, -bound, bound); ki += 1
        params[f"b{idx}"] = jax.random.uniform(
            keys[ki], (1, dim), jnp.float32, -bound, bound); ki += 1
        params[f"g{idx}"] = jax.random.uniform(
            keys[ki], (1, dim), jnp.float32, 0.5, 1.5); ki += 1
        params[f"be{idx}"] = 0.1 * jax.random.normal(keys[ki], (1, dim), jnp.float32); ki += 1
        params[f"rm{idx}"] = 0.1 * jax.random.normal(keys[ki], (1, dim), jnp.float32); ki += 1
        params[f"rv{idx}"] = jax.random.uniform(
            keys[ki], (1, dim), jnp.float32, 0.5, 1.5); ki += 1
        prev = dim
    bound = 1.0 / jnp.sqrt(prev)
    last = len(dims)
    params[f"w{last}"] = jax.random.uniform(
        keys[ki], (prev, 1), jnp.float32, -bound, bound); ki += 1
    params[f"b{last}"] = jax.random.uniform(
        keys[ki], (1, 1), jnp.float32, -bound, bound); ki += 1
    return params


def reference_forward(x1, x2, params):
    """Pure-JAX reference with the original (unfolded) inference semantics."""
    x = jnp.concatenate([x1, x2], axis=1)
    h = jnp.maximum(x @ params["w0"] + params["b0"], 0.0)
    h = (h - params["rm0"]) * jax.lax.rsqrt(params["rv0"] + EPS) * params["g0"] + params["be0"]
    h = jnp.maximum(h @ params["w1"] + params["b1"], 0.0)
    h = (h - params["rm1"]) * jax.lax.rsqrt(params["rv1"] + EPS) * params["g1"] + params["be1"]
    return jax.nn.sigmoid(h @ params["w2"] + params["b2"])


if __name__ == "__main__":
    # Small, MXU-aligned shapes consistent with the module structure
    # (hidden_dims default [512, 256] -> scaled-down [256, 128]).
    batch = 256
    embedding_dim = 128
    hidden_dims = [256, 128]

    key = jax.random.PRNGKey(0)
    kp, k1, k2 = jax.random.split(key, 3)
    params = init_params(kp, embedding_dim, hidden_dims)
    x1 = jax.random.normal(k1, (batch, embedding_dim), jnp.float32)
    x2 = jax.random.normal(k2, (batch, embedding_dim), jnp.float32)

    folded = fold_params(params)

    out = playlist_recommender_forward(x1, x2, folded)
    out = jax.block_until_ready(out)

    ref = reference_forward(x1, x2, params)
    assert out.shape == (batch, 1)
    assert jnp.allclose(out, ref, atol=1e-5, rtol=1e-5), \
        f"max abs err {jnp.max(jnp.abs(out - ref))}"

    print("KERNEL_OK")
</pallas_src>

<mosaic_0001>
module attributes {stable_mosaic.version = 11 : i64} {
  func.func @_mlp_kernel(%arg0: i32, %arg1: memref<128x128xf32, #tpu.memory_space<vmem>>, %arg2: memref<128x128xf32, #tpu.memory_space<vmem>>, %arg3: memref<128x256xf32, #tpu.memory_space<vmem>>, %arg4: memref<128x256xf32, #tpu.memory_space<vmem>>, %arg5: memref<1x256xf32, #tpu.memory_space<vmem>>, %arg6: memref<256x128xf32, #tpu.memory_space<vmem>>, %arg7: memref<1x128xf32, #tpu.memory_space<vmem>>, %arg8: memref<1x128xf32, #tpu.memory_space<vmem>>, %arg9: memref<1x1xf32, #tpu.memory_space<smem>>, %arg10: memref<1x1x128xf32, #tpu.memory_space<vmem>>) attributes {dimension_semantics = [#tpu.dimension_semantics<parallel>], iteration_bounds = array<i64: 2>, scalar_prefetch = 0 : i64, scratch_operands = 0 : i64, tpu.core_type = #tpu.core_type<tc>, window_params = [{transform_indices = @transform_0, window_bounds = array<i64: 128, 128>}, {transform_indices = @transform_1, window_bounds = array<i64: 128, 128>}, {pipeline_mode = #tpu.pipeline_mode<synchronous>, transform_indices = @transform_2, window_bounds = array<i64: 128, 256>}, {pipeline_mode = #tpu.pipeline_mode<synchronous>, transform_indices = @transform_3, window_bounds = array<i64: 128, 256>}, {pipeline_mode = #tpu.pipeline_mode<synchronous>, transform_indices = @transform_4, window_bounds = array<i64: 1, 256>}, {pipeline_mode = #tpu.pipeline_mode<synchronous>, transform_indices = @transform_5, window_bounds = array<i64: 256, 128>}, {pipeline_mode = #tpu.pipeline_mode<synchronous>, transform_indices = @transform_6, window_bounds = array<i64: 1, 128>}, {pipeline_mode = #tpu.pipeline_mode<synchronous>, transform_indices = @transform_7, window_bounds = array<i64: 1, 128>}, {transform_indices = @transform_8, window_bounds = array<i64: 1, 1>}, {transform_indices = @transform_9, window_bounds = array<i64: 1, 1, 128>}]} {
    %c0 = arith.constant 0 : index
    %c0_0 = arith.constant 0 : index
    %0 = vector.load %arg1[%c0, %c0_0] : memref<128x128xf32, #tpu.memory_space<vmem>>, vector<128x128xf32>
    %c0_1 = arith.constant 0 : index
    %c0_2 = arith.constant 0 : index
    %1 = vector.load %arg3[%c0_1, %c0_2] : memref<128x256xf32, #tpu.memory_space<vmem>>, vector<128x256xf32>
    %cst = arith.constant dense<0.000000e+00> : vector<128x256xf32>
    %2 = tpu.matmul %0, %1, %cst {dimension_numbers = #tpu.dot_dimension_numbers<[1], [0], [0], [1], [0, 0, 1, 1], [], []>} : vector<128x128xf32>, vector<128x256xf32>, vector<128x256xf32> -> vector<128x256xf32>
    %c0_3 = arith.constant 0 : index
    %c0_4 = arith.constant 0 : index
    %3 = vector.load %arg2[%c0_3, %c0_4] : memref<128x128xf32, #tpu.memory_space<vmem>>, vector<128x128xf32>
    %c0_5 = arith.constant 0 : index
    %c0_6 = arith.constant 0 : index
    %4 = vector.load %arg4[%c0_5, %c0_6] : memref<128x256xf32, #tpu.memory_space<vmem>>, vector<128x256xf32>
    %cst_7 = arith.constant dense<0.000000e+00> : vector<128x256xf32>
    %5 = tpu.matmul %3, %4, %cst_7 {dimension_numbers = #tpu.dot_dimension_numbers<[1], [0], [0], [1], [0, 0, 1, 1], [], []>} : vector<128x128xf32>, vector<128x256xf32>, vector<128x256xf32> -> vector<128x256xf32>
    %6 = arith.addf %2, %5 : vector<128x256xf32>
    %c0_8 = arith.constant 0 : index
    %c0_9 = arith.constant 0 : index
    %7 = vector.load %arg5[%c0_8, %c0_9] : memref<1x256xf32, #tpu.memory_space<vmem>>, vector<1x256xf32>
    %8 = vector.broadcast %7 : vector<1x256xf32> to vector<128x256xf32>
    %9 = arith.addf %6, %8 : vector<128x256xf32>
    %cst_10 = arith.constant 0.000000e+00 : f32
    %10 = vector.broadcast %cst_10 : f32 to vector<128x256xf32>
    %11 = arith.maximumf %9, %10 : vector<128x256xf32>
    %c0_11 = arith.constant 0 : index
    %c0_12 = arith.constant 0 : index
    %12 = vector.load %arg6[%c0_11, %c0_12] : memref<256x128xf32, #tpu.memory_space<vmem>>, vector<256x128xf32>
    %cst_13 = arith.constant dense<0.000000e+00> : vector<128x128xf32>
    %13 = tpu.matmul %11, %12, %cst_13 {dimension_numbers = #tpu.dot_dimension_numbers<[1], [0], [0], [1], [0, 0, 1, 1], [], []>} : vector<128x256xf32>, vector<256x128xf32>, vector<128x128xf32> -> vector<128x128xf32>
    %c0_14 = arith.constant 0 : index
    %c0_15 = arith.constant 0 : index
    %14 = vector.load %arg7[%c0_14, %c0_15] : memref<1x128xf32, #tpu.memory_space<vmem>>, vector<1x128xf32>
    %15 = vector.broadcast %14 : vector<1x128xf32> to vector<128x128xf32>
    %16 = arith.addf %13, %15 : vector<128x128xf32>
    %cst_16 = arith.constant 0.000000e+00 : f32
    %17 = vector.broadcast %cst_16 : f32 to vector<128x128xf32>
    %18 = arith.maximumf %16, %17 : vector<128x128xf32>
    %c0_17 = arith.constant 0 : index
    %c0_18 = arith.constant 0 : index
    %19 = vector.load %arg8[%c0_17, %c0_18] : memref<1x128xf32, #tpu.memory_space<vmem>>, vector<1x128xf32>
    %cst_19 = arith.constant dense<0.000000e+00> : vector<1x128xf32>
    %20 = tpu.matmul %19, %18, %cst_19 {dimension_numbers = #tpu.dot_dimension_numbers<[1], [1], [0], [0], [0, 0, 1, 0], [], []>} : vector<1x128xf32>, vector<128x128xf32>, vector<1x128xf32> -> vector<1x128xf32>
    %c0_20 = arith.constant 0 : index
    %c0_21 = arith.constant 0 : index
    %21 = memref.load %arg9[%c0_20, %c0_21] : memref<1x1xf32, #tpu.memory_space<smem>>
    %22 = vector.broadcast %21 : f32 to vector<1x128xf32>
    %23 = arith.addf %20, %22 : vector<1x128xf32>
    %24 = arith.negf %23 : vector<1x128xf32>
    %25 = math.exp %24 : vector<1x128xf32>
    %cst_22 = arith.constant 1.000000e+00 : f32
    %26 = vector.broadcast %cst_22 : f32 to vector<1x128xf32>
    %27 = arith.addf %26, %25 : vector<1x128xf32>
    %28 = arith.divf %26, %27 : vector<1x128xf32>
    %c0_23 = arith.constant 0 : index
    %c0_24 = arith.constant 0 : index
    %c0_25 = arith.constant 0 : index
    %29 = vector.load %arg10[%c0_23, %c0_24, %c0_25] : memref<1x1x128xf32, #tpu.memory_space<vmem>>, vector<1x1x128xf32>
    %30 = vector.shape_cast %29 : vector<1x1x128xf32> to vector<1x128xf32>
    %31 = vector.shape_cast %28 : vector<1x128xf32> to vector<1x1x128xf32>
    tpu.vector_store %arg10[%c0_23, %c0_24, %c0_25], %31 {strides = array<i32>} : memref<1x1x128xf32, #tpu.memory_space<vmem>>, vector<1x1x128xf32>,
    return
  }
  func.func @transform_0(%arg0: i32) -> (i32, i32) {
    %c0_i32 = arith.constant 0 : i32
    %c0_i32_0 = arith.constant 0 : i32
    return %arg0, %c0_i32 : i32, i32
  }
  func.func @transform_1(%arg0: i32) -> (i32, i32) {
    %c0_i32 = arith.constant 0 : i32
    %c0_i32_0 = arith.constant 0 : i32
    return %arg0, %c0_i32 : i32, i32
  }
  func.func @transform_2(%arg0: i32) -> (i32, i32) {
    %c0_i32 = arith.constant 0 : i32
    %c0_i32_0 = arith.constant 0 : i32
    %c0_i32_1 = arith.constant 0 : i32
    return %c0_i32, %c0_i32_0 : i32, i32
  }
  func.func @transform_3(%arg0: i32) -> (i32, i32) {
    %c0_i32 = arith.constant 0 : i32
    %c0_i32_0 = arith.constant 0 : i32
    %c0_i32_1 = arith.constant 0 : i32
    return %c0_i32, %c0_i32_0 : i32, i32
  }
  func.func @transform_4(%arg0: i32) -> (i32, i32) {
    %c0_i32 = arith.constant 0 : i32
    %c0_i32_0 = arith.constant 0 : i32
    %c0_i32_1 = arith.constant 0 : i32
    return %c0_i32, %c0_i32_0 : i32, i32
  }
  func.func @transform_5(%arg0: i32) -> (i32, i32) {
    %c0_i32 = arith.constant 0 : i32
    %c0_i32_0 = arith.constant 0 : i32
    %c0_i32_1 = arith.constant 0 : i32
    return %c0_i32, %c0_i32_0 : i32, i32
  }
  func.func @transform_6(%arg0: i32) -> (i32, i32) {
    %c0_i32 = arith.constant 0 : i32
    %c0_i32_0 = arith.constant 0 : i32
    %c0_i32_1 = arith.constant 0 : i32
    return %c0_i32, %c0_i32_0 : i32, i32
  }
  func.func @transform_7(%arg0: i32) -> (i32, i32) {
    %c0_i32 = arith.constant 0 : i32
    %c0_i32_0 = arith.constant 0 : i32
    %c0_i32_1 = arith.constant 0 : i32
    return %c0_i32, %c0_i32_0 : i32, i32
  }
  func.func @transform_8(%arg0: i32) -> (i32, i32) {
    %c0_i32 = arith.constant 0 : i32
    %c0_i32_0 = arith.constant 0 : i32
    %c0_i32_1 = arith.constant 0 : i32
    return %c0_i32, %c0_i32_0 : i32, i32
  }
  func.func @transform_9(%arg0: i32) -> (i32, i32, i32) {
    %c0_i32 = arith.constant 0 : i32
    %c0_i32_0 = arith.constant 0 : i32
    %c0_i32_1 = arith.constant 0 : i32
    return %arg0, %c0_i32, %c0_i32_0 : i32, i32, i32
  }
}

</mosaic_0001>

<bundles_post_ra>
// kernel: playlist_recommender_forward.1
= control target key start
LH: loop header
LB: loop body
LE: loop exit
PB: predicated region body
PF: predicated region fallthrough
CT: control target
= control target key end

     0   :  { %s2015_s0 = inlined_call_operand.hbm [shape: f32[256,128], index: 0, kind: input, shape index: {}]   ;;  %s2016_s1 = inlined_call_operand.hbm [shape: f32[256,128], index: 1, kind: input, shape index: {}]   ;;  %s2017_s2 = inlined_call_operand.hbm [shape: f32[128,256], index: 2, kind: input, shape index: {}]   ;;  %s2018_s3 = inlined_call_operand.hbm [shape: f32[128,256], index: 3, kind: input, shape index: {}]   ;;  %s2019_s4 = inlined_call_operand.vmem [shape: f32[1,256], index: 4, kind: input, shape index: {}]   ;;  %s2020_s5 = inlined_call_operand.hbm [shape: f32[256,128], index: 5, kind: input, shape index: {}]   ;;  %s2021_s6 = inlined_call_operand.vmem [shape: f32[1,128], index: 6, kind: input, shape index: {}]   ;;  %s2022_s7 = inlined_call_operand.vmem [shape: f32[1,128], index: 7, kind: input, shape index: {}]   ;;  %s2023_s8 = inlined_call_operand.<no memory space> [shape: f32[1,1], index: 8, kind: input, shape index: {}]   ;;  %s2024_s9 = inlined_call_operand.hbm [shape: f32[2,1,128], index: 9, kind: output, shape index: {}]  }
   0x1   :  { %2030 = sst [smem:[#allocation20_spill]] %s2015_s0 }
   0x2   :  { %2031 = sst [smem:[#allocation21_spill]] %s2017_s2 }
   0x3   :  { %2032 = sst [smem:[#allocation22_spill]] %s2018_s3 }
   0x4   :  { %2033 = sst [smem:[#allocation23_spill]] %s2020_s5 }
   0x5   :  { %14 = sst [smem:[#allocation2]] %s2023_s8 }
   0x6   :  { %15 = vsyncpa [#allocation4], 0 }
   0x7   :  { %17 = vsyncpa [#allocation4 + $0x1], 0 }
   0x8   :  { %18 = vsyncpa [#allocation7], 0 }
   0x9   :  { %20 = vsyncpa [#allocation7 + $0x1], 0 }
   0xa   :  { %21 = vsyncpa [#allocation10], 0 }
   0xb   :  { %22 = vsyncpa [#allocation5], 0 }
   0xc   :  { %24 = vsyncpa [#allocation5 + $0x1], 0  ;;  %s1663_s11 = smov 0   ;;  %s1665_s12 = smov 0  }
   0xd   :  { %s1667_s13 = smov 0   ;;  %s1669_s14 = smov 0  }
   0xe LB: > { %2034 = sst [smem:[#allocation18_spill]] %s1597_s13  ;;  %s1684_s8 = sadd.s32 4294967295, %s1601_s14   ;;  %s1601_s14 = sphi %s1669_s14, %s2053_s14   ;;  %s1597_s13 = sphi %s1667_s13, %s2050_s13   ;;  %s1593_s12 = sphi %s1665_s12, %s2052_s12   ;;  %s1589_s11 = sphi %s1663_s11, %s2051_s11  }
   0xf   : > { %s1227_s15 = sadd.s32 4294967294, %s1601_s14   ;;  %p50_p0 = scmp.ne.s32.totalorder %s1593_s12, %s1589_s11 }
  0x10   : > { %p51_p1 = scmp.eq.s32.totalorder %s1684_s8, 0  ;;  %p247_p2 = scmp.eq.s32.totalorder %s1684_s8, 1 }
  0x11   : > { %p253_p3 = scmp.eq.s32.totalorder %s1227_s15, 1  ;;  %p1228_p5 = scmp.ge.s32.totalorder %s1601_s14, 1 }
  0x12   : > { %p1693_p4 = por %p51_p1, %p50_p0  ;;  %p260_p7 = scmp.lt.s32.totalorder %s1601_s14, 3 }
  0x13   : > { %p1698_p6 = por %p253_p3, %p50_p0  ;;  %s2037_s2 = sld [smem:[#allocation21_spill]] }
  0x14   : > { %p1706_p8 = pnand %p1228_p5, %p260_p7  ;;  %s1603_s22 = smov [#allocation8]  }
  0x15   : > { %s273_s23 = sshll.u32 %s1603_s22, 4  ;;  %s2040_s3 = sld [smem:[#allocation22_spill]]  ;;  %s274_s23 = int_to_ptr.vmem [resolvable:$true] %s273_s23 }
  0x16   : > { %p1300_p9 = pneg %p1706_p8  ;;  %s1604_s28 = smov 256  }
  0x17   : > { %s1605_s29 = smov 16   ;;  %s1606_s30 = smov [#allocation9]  }
  0x18   : > { %p1714_p10 = pnand %p1300_p9, %p51_p1  ;;  %s287_s10 = sshll.u32 %s1606_s30, 4  ;;  %s288_s10 = int_to_ptr.vmem [resolvable:$true] %s287_s10 }
  0x19   : > { %s271_s20 = sshll.u32 %s2037_s2, 4  ;;  %s2041_s5 = sld [smem:[#allocation23_spill]]  ;;  %s272_s20 = int_to_ptr.hbm [resolvable:$true] %s271_s20 }
  0x1a   : > { %1303 = dma.hbm_to_vmem [thread:$0]  (!%p1714_p10), %s272_s20, 4096, %s274_s23, [#allocation7], %s1604_s28, %s1604_s28, %s1605_s29  }
  0x1b   : > { %s285_s27 = sshll.u32 %s2040_s3, 4  ;;  %s1607_s22 = smov [#allocation11]   ;;  %s286_s27 = int_to_ptr.hbm [resolvable:$true] %s285_s27 }
  0x1c   : > { %1306 = dma.hbm_to_vmem [thread:$0]  (!%p1714_p10), %s286_s27, 4096, %s288_s10, [#allocation10], %s1604_s28, %s1604_s28, %s1605_s29  }
  0x1d   : > { %s304_s25 = sshll.u32 %s1607_s22, 4  ;;  %s2025_s20 = smov 128   ;;  %s305_s25 = int_to_ptr.vmem [resolvable:$true] %s304_s25 }
  0x1e   : > { %s2027_s23 = smov 8   ;;  %s1735_s26 = sadd.s32 1, %s1601_s14  }
  0x1f   : > { %s302_s19 = sshll.u32 %s2041_s5, 4  ;;  %s34_s30 = ssub.s32 %s1601_s14, %s1735_s26  ;;  %s303_s19 = int_to_ptr.hbm [resolvable:$true] %s302_s19 }
  0x20   : > { %1309 = dma.hbm_to_vmem [thread:$0]  (!%p1714_p10), %s303_s19, 4096, %s305_s25, [#allocation10], %s2025_s20, %s2025_s20, %s2027_s23  }
  0x21   : > { %s37_s15 = sadd.s32 1, %s1597_s13  ;;  %p35_p12 = scmp.eq.s32.totalorder %s34_s30, 0 }
  0x22   : > { %p44_p13 = scmp.ne.s32.totalorder %s1597_s13, %s1593_s12  ;;  %p45_p0 = scmp.eq.s32.totalorder %s1601_s14, 0 }
  0x23   : > { %p1324_p3 = scmp.lt.s32.totalorder %s1601_s14, 2  ;;  %s327_s28 = sand.u32 1, %s1597_s13  }
  0x24   : > { %s1745_s27 = scalar_select %p35_p12, %s1597_s13, %s37_s15  }
  0x25   : > { %p46_p5 = por %p45_p0, %p44_p13  ;;  %p1749_p7 = por %p247_p2, %p44_p13 }
  0x26   : > { %2042 = sst [smem:[#allocation19_spill]] %s1745_s27  ;;  %s1248_s29 = sshll.u32 %s1601_s14, 7 }
  0x27   : > { %s1233_s10 = sshll.u32 %s327_s28, 7  ;;  %s2044_s0 = sld [smem:[#allocation20_spill]] }
  0x28   : > { %s331_s30 = scalar_lea.vmem [#allocation3], %s1233_s10  ;;  %p1760_p9 = pnand %p1324_p3, %p46_p5 }
  0x29   : > { %s339_s20 = sshll.u32 %s331_s30, 4  ;;  %s358_s3 = scalar_lea.hbm %s2016_s1, %s1248_s29  ;;  %s340_s20 = int_to_ptr.vmem [resolvable:$true] %s339_s20 }
  0x2a   : > { %s353_s5 = scalar_lea.vmem [#allocation6], %s1233_s10  ;;  %s359_s18 = sshll.u32 %s358_s3, 4  ;;  %s360_s18 = int_to_ptr.hbm [resolvable:$true] %s359_s18 }
  0x2b   : > { %s1767_s27 = sshll.u32 %s353_s5, 4  ;;  %s328_s19 = scalar_lea.sflag [#allocation4], %s327_s28  ;;  %s362_s27 = int_to_ptr.vmem [resolvable:$true] %s1767_s27 }
  0x2c   : > { %p1467_p10 = pneg %p1760_p9 }
  0x2d   : > { %s336_s22 = scalar_lea.hbm %s2044_s0, %s1248_s29  ;;  %s1470_s23 = scalar_lea.hbm %s2044_s0, 256 }
  0x2e   : > { %s337_s25 = sshll.u32 %s336_s22, 4  ;;  %s338_s25 = int_to_ptr.hbm [resolvable:$true] %s337_s25 }
  0x2f   : > { %s1463_s22 = sshra.s32 %s338_s25, 4  ;;  %s1464_s22 = int_to_ptr.hbm [resolvable:$true] %s1463_s22 }
  0x30   : > { %s1465_s30 = scalar_lea.hbm %s1464_s22, 128  ;;  %p1471_p0 = scmp.lt.s32.totalorder %s1464_s22, %s2044_s0 }
  0x31   : > { %p1466_p2 = scmp.ne.s32.totalorder %s1464_s22, %s1465_s30  ;;  %p1472_p3 = scmp.lt.s32.totalorder %s1470_s23, %s1465_s30 }
  0x33   : > { %p1468_p12 = pnand %p1467_p10, %p1466_p2  ;;  %p1473_p5 = por %p1472_p3, %p1471_p0 }
  0x35   : > { %p1469_p13 = pneg %p1468_p12 }
  0x37   : > { %p1474_p11 = pnand %p1473_p5, %p1469_p13 }
  0x39   : > { %1477 = shalt.err (!%p1474_p11)
}
  0x3a   : > { %s2046_s3 = smov 8   ;;  %s2047_s5 = smov 128  }
  0x3b   : > { %1313 = dma.hbm_to_vmem [thread:$0]  (!%p1760_p9), %s338_s25, 2048, %s340_s20, %s328_s19, %s2047_s5, %s2047_s5, %s2046_s3  }
  0x3c   : > { %s349_s13 = sand.u32 1, %s1601_s14   ;;  %s1493_s2 = sshra.s32 %s360_s18, 4  ;;  %s1494_s2 = int_to_ptr.hbm [resolvable:$true] %s1493_s2 }
  0x3d   : > { %s350_s28 = scalar_lea.sflag [#allocation7], %s349_s13  ;;  %s1495_s22 = scalar_lea.hbm %s1494_s2, 128 }
  0x3e   : > { %p1496_p2 = scmp.ne.s32.totalorder %s1494_s2, %s1495_s22  ;;  %s1500_s29 = scalar_lea.hbm %s2016_s1, 256 }
  0x3f   : > { %p1501_p13 = scmp.lt.s32.totalorder %s1494_s2, %s2016_s1  ;;  %p1502_p0 = scmp.lt.s32.totalorder %s1500_s29, %s1495_s22 }
  0x40   : > { %p1498_p11 = pnand %p1496_p2, %p1467_p10 }
  0x41   : > { %p1503_p3 = por %p1502_p0, %p1501_p13 }
  0x42   : > { %p1499_p12 = pneg %p1498_p11 }
  0x44   : > { %p1504_p5 = pnand %p1503_p3, %p1499_p12 }
  0x46   : > { %1507 = shalt.err (!%p1504_p5)
}
  0x47   : > { %1316 = dma.hbm_to_vmem [thread:$0]  (!%p1760_p9), %s360_s18, 2048, %s362_s27, %s350_s28, %s2047_s5, %s2047_s5, %s2046_s3  }
  0x48   : > { %373 = sbr.rel (%p1706_p8) target bundleno = 791 (0x317), region = 56  ;;  %s1804_s20 = sand.u32 (!%p1706_p8), 1, %s1593_s12  }
  0x49   : > { %s1240_s0 = sshll.u32 (!%p1706_p8), %s1804_s20, 7  ;;  %s376_s25 = scalar_lea.sflag (!%p1706_p8), [#allocation4], %s1804_s20 }
  0x4a   : > { %s1808_s19 = scalar_lea.vmem (!%p1706_p8), [#allocation3], %s1240_s0 }
  0x4d   : > { %1568 = dma.done.wait (%p1693_p4), %s376_s25, 2048  }
  0x4e   : > { %1570 = vsyncadd (%p1693_p4), %s376_s25, 4294965248  ;;  %s385_s27 = sand.u32 1, %s1684_s8   ;;  %s1815_s15 = scalar_lea.vmem [#allocation6], %s1240_s0 }
  0x4f   : > { %s386_s21 = scalar_lea.sflag [#allocation7], %s385_s27 }
  0x50   : > { %1572 = dma.done.wait (%p1693_p4), %s386_s21, 2048  }
  0x51   : > { %1574 = vsyncadd (%p1693_p4), %s386_s21, 4294965248 }
  0x52   : > { %1576 = dma.done.wait (%p51_p1), [#allocation7], 4096  }
  0x53   : > { %1578 = vsyncadd (%p51_p1), [#allocation7], 4294963200 }
  0x54   : > { %1580 = dma.done.wait (%p51_p1), [#allocation10], 8192  }
  0x55   : > { %1582 = vsyncadd (%p51_p1), [#allocation10], 4294959104  ;;  %v540_v0 = vld [vmem:[#allocation9 + $0xf0] sm:$0xff]  ;;  %v541_v1 = vld [vmem:[#allocation9 + $0xf8] sm:$0xff]  ;;  %s1055_s2 = sld [smem:[#allocation2]]  ;;  %s1106_s23 = scalar_lea.hbm %s2024_s9, %s1684_s8 }
  0x56   : > { %v538_v2 = vld [vmem:[#allocation9 + $0xe0] sm:$0xff]  ;;  %1250 = vmatpush.msra.mxu3 %v540_v0  ;;  %1266 = vmatpush.msra.mxu2 %v541_v1  ;;  %v539_v3 = vld [vmem:[#allocation9 + $0xe8] sm:$0xff]  ;;  %v536_v4 = vld [vmem:[#allocation9 + $0xd0] sm:$0xff]  ;;  %s443_s29 = scalar_lea.vmem [#allocation12], %s1804_s20  ;;  %s1110_s0 = sshll.u32 %s1106_s23, 4  ;;  %s1111_s0 = int_to_ptr.hbm [resolvable:$true] %s1110_s0 }
  0x57   : > { %v537_v5 = vld [vmem:[#allocation9 + $0xd8] sm:$0xff]  ;;  %542 = vmatpush.msra.mxu0 %v540_v0  ;;  %607 = vmatpush.msra.mxu1 %v541_v1  ;;  %v534_v6 = vld [vmem:[#allocation9 + $0xc0] sm:$0xff]  ;;  %v535_v7 = vld [vmem:[#allocation9 + $0xc8] sm:$0xff]  ;;  %s1108_s10 = sshll.u32 %s443_s29, 4  ;;  %s1098_s8 = scalar_lea.sflag [#allocation5], %s1804_s20  ;;  %s1109_s10 = int_to_ptr.vmem [resolvable:$true] %s1108_s10 }
  0x58   : > { %1251 = vmatpush.msra.mxu3 %v538_v2  ;;  %1267 = vmatpush.msra.mxu2 %v539_v3  ;;  %v532_v8 = vld [vmem:[#allocation9 + $0xb0] sm:$0xff]  ;;  %v533_v9 = vld [vmem:[#allocation9 + $0xb8] sm:$0xff]  ;;  %v530_v10 = vld [vmem:[#allocation9 + $0xa0] sm:$0xff]  ;;  %s1537_s25 = sshra.s32 %s1111_s0, 4  ;;  %s1538_s25 = int_to_ptr.hbm [resolvable:$true] %s1537_s25 }
  0x59   : > { %543 = vmatpush.msra.mxu0 %v538_v2  ;;  %608 = vmatpush.msra.mxu1 %v539_v3  ;;  %v531_v11 = vld [vmem:[#allocation9 + $0xa8] sm:$0xff]  ;;  %v528_v12 = vld [vmem:[#allocation9 + $0x90] sm:$0xff]  ;;  %v529_v13 = vld [vmem:[#allocation9 + $0x98] sm:$0xff]  ;;  %p1544_p9 = scmp.lt.s32.totalorder %s1538_s25, %s2024_s9 }
  0x5a   : > { %1252 = vmatpush.msra.mxu3 %v536_v4  ;;  %1268 = vmatpush.msra.mxu2 %v537_v5  ;;  %v526_v14 = vld [vmem:[#allocation9 + $0x80] sm:$0xff]  ;;  %v527_v15 = vld [vmem:[#allocation9 + $0x88] sm:$0xff]  ;;  %v524_v16 = vld [vmem:[#allocation9 + $0x70] sm:$0xff] }
  0x5b   : > { %544 = vmatpush.msra.mxu0 %v536_v4  ;;  %609 = vmatpush.msra.mxu1 %v537_v5  ;;  %v525_v17 = vld [vmem:[#allocation9 + $0x78] sm:$0xff]  ;;  %v522_v18 = vld [vmem:[#allocation9 + $0x60] sm:$0xff]  ;;  %v523_v19 = vld [vmem:[#allocation9 + $0x68] sm:$0xff] }
  0x5c   : > { %1253 = vmatpush.msra.mxu3 %v534_v6  ;;  %1269 = vmatpush.msra.mxu2 %v535_v7  ;;  %v520_v20 = vld [vmem:[#allocation9 + $0x50] sm:$0xff]  ;;  %v521_v21 = vld [vmem:[#allocation9 + $0x58] sm:$0xff]  ;;  %v518_v22 = vld [vmem:[#allocation9 + $0x40] sm:$0xff] }
  0x5d   : > { %545 = vmatpush.msra.mxu0 %v534_v6  ;;  %610 = vmatpush.msra.mxu1 %v535_v7  ;;  %v519_v23 = vld [vmem:[#allocation9 + $0x48] sm:$0xff]  ;;  %v516_v24 = vld [vmem:[#allocation9 + $0x30] sm:$0xff]  ;;  %v517_v25 = vld [vmem:[#allocation9 + $0x38] sm:$0xff] }
  0x5e   : > { %1254 = vmatpush.msra.mxu3 %v532_v8  ;;  %1270 = vmatpush.msra.mxu2 %v533_v9  ;;  %v514_v26 = vld [vmem:[#allocation9 + $0x20] sm:$0xff]  ;;  %v515_v27 = vld [vmem:[#allocation9 + $0x28] sm:$0xff]  ;;  %v512_v28 = vld [vmem:[#allocation9 + $0x10] sm:$0xff] }
  0x5f   : > { %546 = vmatpush.msra.mxu0 %v532_v8  ;;  %611 = vmatpush.msra.mxu1 %v533_v9  ;;  %v513_v29 = vld [vmem:[#allocation9 + $0x18] sm:$0xff]  ;;  %v510_v30 = vld [vmem:[#allocation9] sm:$0xff]  ;;  %v511_v31 = vld [vmem:[#allocation9 + $0x8] sm:$0xff] }
  0x60   : > { %1255 = vmatpush.msra.mxu3 %v530_v10  ;;  %1271 = vmatpush.msra.mxu2 %v531_v11  ;;  %v503_v32 = vld [vmem:[%s1815_s15 + $0x48] sm:$0xff]  ;;  %v492_v33 = vld [vmem:[#allocation8 + $0xf0] sm:$0xff]  ;;  %v493_v34 = vld [vmem:[#allocation8 + $0xf8] sm:$0xff] }
  0x61   : > { %547 = vmatpush.msra.mxu0 %v530_v10  ;;  %612 = vmatpush.msra.mxu1 %v531_v11  ;;  %v490_v35 = vld [vmem:[#allocation8 + $0xe0] sm:$0xff]  ;;  %v491_v36 = vld [vmem:[#allocation8 + $0xe8] sm:$0xff]  ;;  %v488_v37 = vld [vmem:[#allocation8 + $0xd0] sm:$0xff] }
  0x62   : > { %1256 = vmatpush.msra.mxu3 %v528_v12  ;;  %1272 = vmatpush.msra.mxu2 %v529_v13  ;;  %v489_v38 = vld [vmem:[#allocation8 + $0xd8] sm:$0xff]  ;;  %v486_v39 = vld [vmem:[#allocation8 + $0xc0] sm:$0xff]  ;;  %v487_v40 = vld [vmem:[#allocation8 + $0xc8] sm:$0xff] }
  0x63   : > { %548 = vmatpush.msra.mxu0 %v528_v12  ;;  %613 = vmatpush.msra.mxu1 %v529_v13  ;;  %v504_v41 = vld [vmem:[%s1815_s15 + $0x50] sm:$0xff]  ;;  %v485_v43 = vld [vmem:[#allocation8 + $0xb8] sm:$0xff]  ;;  %v482_v44 = vld [vmem:[#allocation8 + $0xa0] sm:$0xff] }
  0x64   : > { %1257 = vmatpush.msra.mxu3 %v526_v14  ;;  %1273 = vmatpush.msra.mxu2 %v527_v15  ;;  %v484_v42 = vld [vmem:[#allocation8 + $0xb0] sm:$0xff]  ;;  %v483_v45 = vld [vmem:[#allocation8 + $0xa8] sm:$0xff]  ;;  %v481_v47 = vld [vmem:[#allocation8 + $0x98] sm:$0xff] }
  0x65   : > { %549 = vmatpush.msra.mxu0 %v526_v14  ;;  %614 = vmatpush.msra.mxu1 %v527_v15  ;;  %v480_v46 = vld [vmem:[#allocation8 + $0x90] sm:$0xff]  ;;  %v478_v48 = vld [vmem:[#allocation8 + $0x80] sm:$0xff]  ;;  %v479_v49 = vld [vmem:[#allocation8 + $0x88] sm:$0xff] }
  0x66   : > { %1258 = vmatpush.msra.mxu3 %v524_v16  ;;  %1274 = vmatpush.msra.mxu2 %v525_v17  ;;  %v505_v50 = vld [vmem:[%s1815_s15 + $0x58] sm:$0xff]  ;;  %v476_v51 = vld [vmem:[#allocation8 + $0x70] sm:$0xff]  ;;  %v474_v53 = vld [vmem:[#allocation8 + $0x60] sm:$0xff] }
  0x67   : > { %550 = vmatpush.msra.mxu0 %v524_v16  ;;  %615 = vmatpush.msra.mxu1 %v525_v17  ;;  %v477_v52 = vld [vmem:[#allocation8 + $0x78] sm:$0xff]  ;;  %v475_v54 = vld [vmem:[#allocation8 + $0x68] sm:$0xff]  ;;  %v472_v55 = vld [vmem:[#allocation8 + $0x50] sm:$0xff] }
  0x68   : > { %1259 = vmatpush.msra.mxu3 %v522_v18  ;;  %1275 = vmatpush.msra.mxu2 %v523_v19  ;;  %v473_v56 = vld [vmem:[#allocation8 + $0x58] sm:$0xff]  ;;  %v470_v57 = vld [vmem:[#allocation8 + $0x40] sm:$0xff]  ;;  %v471_v58 = vld [vmem:[#allocation8 + $0x48] sm:$0xff] }
  0x69   : > { %551 = vmatpush.msra.mxu0 %v522_v18  ;;  %616 = vmatpush.msra.mxu1 %v523_v19  ;;  %v506_v59 = vld [vmem:[%s1815_s15 + $0x60] sm:$0xff]  ;;  %v468_v60 = vld [vmem:[#allocation8 + $0x30] sm:$0xff]  ;;  %v469_v61 = vld [vmem:[#allocation8 + $0x38] sm:$0xff] }
  0x6a   : > { %1260 = vmatpush.msra.mxu3 %v520_v20  ;;  %1276 = vmatpush.msra.mxu2 %v521_v21  ;;  %v466_v62 = vld [vmem:[#allocation8 + $0x20] sm:$0xff]  ;;  %v467_v63 = vld [vmem:[#allocation8 + $0x28] sm:$0xff]  ;;  %v464_v1 = vld [vmem:[#allocation8 + $0x10] sm:$0xff] }
  0x6b   : > { %552 = vmatpush.msra.mxu0 %v520_v20  ;;  %617 = vmatpush.msra.mxu1 %v521_v21  ;;  %v494_v0 = vld [vmem:[%s1815_s15] sm:$0xff]  ;;  %v465_v2 = vld [vmem:[#allocation8 + $0x18] sm:$0xff]  ;;  %v463_v4 = vld [vmem:[#allocation8 + $0x8] sm:$0xff] }
  0x6c   : > { %1261 = vmatpush.msra.mxu3 %v518_v22  ;;  %1277 = vmatpush.msra.mxu2 %v519_v23  ;;  %v462_v3 = vld [vmem:[#allocation8] sm:$0xff]  ;;  %v507_v5 = vld [vmem:[%s1815_s15 + $0x68] sm:$0xff]  ;;  %v508_v7 = vld [vmem:[%s1815_s15 + $0x70] sm:$0xff] }
  0x6d   : > { %553 = vmatpush.msra.mxu0 %v518_v22  ;;  %618 = vmatpush.msra.mxu1 %v519_v23  ;;  %v495_v6 = vld [vmem:[%s1815_s15 + $0x8] sm:$0xff]  ;;  %v496_v8 = vld [vmem:[%s1815_s15 + $0x10] sm:$0xff]  ;;  %v509_v9 = vld [vmem:[%s1815_s15 + $0x78] sm:$0xff] }
  0x6e   : > { %1262 = vmatpush.msra.mxu3 %v516_v24  ;;  %1278 = vmatpush.msra.mxu2 %v517_v25  ;;  %v497_v10 = vld [vmem:[%s1815_s15 + $0x18] sm:$0xff]  ;;  %v446_v11 = vld [vmem:[%s1808_s19] sm:$0xff]  ;;  %v447_v13 = vld [vmem:[%s1808_s19 + $0x8] sm:$0xff] }
  0x6f   : > { %554 = vmatpush.msra.mxu0 %v516_v24  ;;  %619 = vmatpush.msra.mxu1 %v517_v25  ;;  %v498_v12 = vld [vmem:[%s1815_s15 + $0x20] sm:$0xff]  ;;  %v499_v14 = vld [vmem:[%s1815_s15 + $0x28] sm:$0xff]  ;;  %v448_v15 = vld [vmem:[%s1808_s19 + $0x10] sm:$0xff] }
  0x70   : > { %1263 = vmatpush.msra.mxu3 %v514_v26  ;;  %1279 = vmatpush.msra.mxu2 %v515_v27  ;;  %v500_v16 = vld [vmem:[%s1815_s15 + $0x30] sm:$0xff]  ;;  %v449_v17 = vld [vmem:[%s1808_s19 + $0x18] sm:$0xff]  ;;  %v450_v19 = vld [vmem:[%s1808_s19 + $0x20] sm:$0xff] }
  0x71   : > { %555 = vmatpush.msra.mxu0 %v514_v26  ;;  %620 = vmatpush.msra.mxu1 %v515_v27  ;;  %v501_v18 = vld [vmem:[%s1815_s15 + $0x38] sm:$0xff]  ;;  %v502_v20 = vld [vmem:[%s1815_s15 + $0x40] sm:$0xff]  ;;  %v451_v21 = vld [vmem:[%s1808_s19 + $0x28] sm:$0xff]  ;;  %s1543_s15 = scalar_lea.hbm %s2024_s9, 2 }
  0x72   : > { %1264 = vmatpush.msra.mxu3 %v512_v28  ;;  %1280 = vmatpush.msra.mxu2 %v513_v29  ;;  %v452_v22 = vld [vmem:[%s1808_s19 + $0x30] sm:$0xff]  ;;  %v453_v23 = vld [vmem:[%s1808_s19 + $0x38] sm:$0xff]  ;;  %v454_v24 = vld [vmem:[%s1808_s19 + $0x40] sm:$0xff] }
  0x73   : > { %556 = vmatpush.msra.mxu0 %v512_v28  ;;  %621 = vmatpush.msra.mxu1 %v513_v29  ;;  %v455_v25 = vld [vmem:[%s1808_s19 + $0x48] sm:$0xff]  ;;  %v887_v26 = vld [vmem:[#allocation11 + $0x78] sm:$0xff] }
  0x74   : > { %1265 = vmatpush.msra.mxu3 %v510_v30  ;;  %1281 = vmatpush.msra.mxu2 %v511_v31  ;;  %v903_v27 = vld [vmem:[#allocation11 + $0xf8] sm:$0xff] }
  0x75   : > { %585 = vmatmul.f32.vlgmr.msra.gmra.mxu3 %v503_v32  ;;  %650 = vmatmul.f32.vlgmr.msra.gmra.mxu2 %v503_v32  ;;  %v885_v32 = vld [vmem:[#allocation11 + $0x68] sm:$0xff] }
  0x76   : > { %672 = vmatpush.msrb.mxu2 %v492_v33  ;;  %737 = vmatpush.msrb.mxu3 %v493_v34  ;;  %v901_v33 = vld [vmem:[#allocation11 + $0xe8] sm:$0xff]  ;;  %v456_v34 = vld [vmem:[%s1808_s19 + $0x50] sm:$0xff] }
  0x77   : > { %557 = vmatpush.msra.mxu0 %v510_v30  ;;  %622 = vmatpush.msra.mxu1 %v511_v31  ;;  %v886_v30 = vld [vmem:[#allocation11 + $0x70] sm:$0xff] }
  0x78   : > { %673 = vmatpush.msrb.mxu2 %v490_v35  ;;  %738 = vmatpush.msrb.mxu3 %v491_v36  ;;  %v902_v31 = vld [vmem:[#allocation11 + $0xf0] sm:$0xff]  ;;  %v884_v35 = vld [vmem:[#allocation11 + $0x60] sm:$0xff] }
  0x79   : > { %558 = vmatmul.f32.vlgmr.msra.gmra.mxu0 %v494_v0  ;;  %623 = vmatmul.f32.vlgmr.msra.gmra.mxu1 %v494_v0  ;;  %v900_v36 = vld [vmem:[#allocation11 + $0xe0] sm:$0xff]  ;;  %v890_v0 = vld [vmem:[#allocation11 + $0x90] sm:$0xff] }
  0x7a   : > { %674 = vmatpush.msrb.mxu2 %v488_v37  ;;  %739 = vmatpush.msrb.mxu3 %v489_v38  ;;  %v883_v37 = vld [vmem:[#allocation11 + $0x58] sm:$0xff] }
  0x7b   : > { %908 = vmatpush.msrb.mxu0 %v887_v26  ;;  %973 = vmatpush.msrb.mxu1 %v903_v27  ;;  %v899_v38 = vld [vmem:[#allocation11 + $0xd8] sm:$0xff] }
  0x7c   : > { %675 = vmatpush.msrb.mxu2 %v486_v39  ;;  %740 = vmatpush.msrb.mxu3 %v487_v40 }
  0x7d   : > { %588 = vmatmul.f32.gmra.mxu3 %v504_v41  ;;  %653 = vmatmul.f32.gmra.mxu2 %v504_v41  ;;  %v882_v41 = vld [vmem:[#allocation11 + $0x50] sm:$0xff] }
  0x7e   : > { %676 = vmatpush.msrb.mxu2 %v484_v42  ;;  %741 = vmatpush.msrb.mxu3 %v485_v43  ;;  %v898_v42 = vld [vmem:[#allocation11 + $0xd0] sm:$0xff]  ;;  %v881_v43 = vld [vmem:[#allocation11 + $0x48] sm:$0xff] }
  0x7f   : > { %909 = vmatpush.msrb.mxu0 %v886_v30  ;;  %974 = vmatpush.msrb.mxu1 %v902_v31 }
  0x80   : > { %677 = vmatpush.msrb.mxu2 %v482_v44  ;;  %742 = vmatpush.msrb.mxu3 %v483_v45  ;;  %v897_v44 = vld [vmem:[#allocation11 + $0xc8] sm:$0xff]  ;;  %v457_v45 = vld [vmem:[%s1808_s19 + $0x58] sm:$0xff] }
  0x81   : > { %561 = vmatmul.f32.gmra.mxu0 %v495_v6  ;;  %626 = vmatmul.f32.gmra.mxu1 %v495_v6 }
  0x82   : > { %678 = vmatpush.msrb.mxu2 %v480_v46  ;;  %743 = vmatpush.msrb.mxu3 %v481_v47  ;;  %v880_v46 = vld [vmem:[#allocation11 + $0x40] sm:$0xff] }
  0x83   : > { %910 = vmatpush.msrb.mxu0 %v885_v32  ;;  %975 = vmatpush.msrb.mxu1 %v901_v33  ;;  %v896_v47 = vld [vmem:[#allocation11 + $0xc0] sm:$0xff] }
  0x84   : > { %679 = vmatpush.msrb.mxu2 %v478_v48  ;;  %744 = vmatpush.msrb.mxu3 %v479_v49  ;;  %v879_v48 = vld [vmem:[#allocation11 + $0x38] sm:$0xff] }
  0x85   : > { %591 = vmatmul.f32.gmra.mxu3 %v505_v50  ;;  %656 = vmatmul.f32.gmra.mxu2 %v505_v50  ;;  %v895_v49 = vld [vmem:[#allocation11 + $0xb8] sm:$0xff] }
  0x86   : > { %680 = vmatpush.msrb.mxu2 %v476_v51  ;;  %745 = vmatpush.msrb.mxu3 %v477_v52  ;;  %v878_v52 = vld [vmem:[#allocation11 + $0x30] sm:$0xff] }
  0x87   : > { %911 = vmatpush.msrb.mxu0 %v884_v35  ;;  %976 = vmatpush.msrb.mxu1 %v900_v36 }
  0x88   : > { %681 = vmatpush.msrb.mxu2 %v474_v53  ;;  %746 = vmatpush.msrb.mxu3 %v475_v54  ;;  %v894_v53 = vld [vmem:[#allocation11 + $0xb0] sm:$0xff]  ;;  %v877_v54 = vld [vmem:[#allocation11 + $0x28] sm:$0xff] }
  0x89   : > { %564 = vmatmul.f32.gmra.mxu0 %v496_v8  ;;  %629 = vmatmul.f32.gmra.mxu1 %v496_v8  ;;  %v460_v8 = vld [vmem:[%s1808_s19 + $0x70] sm:$0xff] }
  0x8a   : > { %682 = vmatpush.msrb.mxu2 %v472_v55  ;;  %747 = vmatpush.msrb.mxu3 %v473_v56  ;;  %v893_v55 = vld [vmem:[#allocation11 + $0xa8] sm:$0xff]  ;;  %v458_v56 = vld [vmem:[%s1808_s19 + $0x60] sm:$0xff] }
  0x8b   : > { %912 = vmatpush.msrb.mxu0 %v883_v37  ;;  %977 = vmatpush.msrb.mxu1 %v899_v38 }
  0x8c   : > { %683 = vmatpush.msrb.mxu2 %v470_v57  ;;  %748 = vmatpush.msrb.mxu3 %v471_v58  ;;  %v876_v57 = vld [vmem:[#allocation11 + $0x20] sm:$0xff] }
  0x8d   : > { %594 = vmatmul.f32.gmra.mxu3 %v506_v59  ;;  %659 = vmatmul.f32.gmra.mxu2 %v506_v59  ;;  %v892_v58 = vld [vmem:[#allocation11 + $0xa0] sm:$0xff]  ;;  %v875_v59 = vld [vmem:[#allocation11 + $0x18] sm:$0xff] }
  0x8e   : > { %684 = vmatpush.msrb.mxu2 %v468_v60  ;;  %749 = vmatpush.msrb.mxu3 %v469_v61  ;;  %v891_v60 = vld [vmem:[#allocation11 + $0x98] sm:$0xff] }
  0x8f   : > { %913 = vmatpush.msrb.mxu0 %v882_v41  ;;  %978 = vmatpush.msrb.mxu1 %v898_v42 }
  0x90   : > { %685 = vmatpush.msrb.mxu2 %v466_v62  ;;  %750 = vmatpush.msrb.mxu3 %v467_v63  ;;  %v874_v63 = vld [vmem:[#allocation11 + $0x10] sm:$0xff] }
  0x91   : > { %567 = vmatmul.f32.gmra.mxu0 %v497_v10  ;;  %632 = vmatmul.f32.gmra.mxu1 %v497_v10 }
  0x92   : > { %686 = vmatpush.msrb.mxu2 %v464_v1  ;;  %751 = vmatpush.msrb.mxu3 %v465_v2  ;;  %v459_v1 = vld [vmem:[%s1808_s19 + $0x68] sm:$0xff] }
  0x93   : > { %914 = vmatpush.msrb.mxu0 %v881_v43  ;;  %979 = vmatpush.msrb.mxu1 %v897_v44  ;;  %v873_v2 = vld [vmem:[#allocation11 + $0x8] sm:$0xff] }
  0x94   : > { %687 = vmatpush.msrb.mxu2 %v462_v3  ;;  %752 = vmatpush.msrb.mxu3 %v463_v4  ;;  %v889_v3 = vld [vmem:[#allocation11 + $0x88] sm:$0xff]  ;;  %v872_v4 = vld [vmem:[#allocation11] sm:$0xff] }
  0x95   : > { %597 = vmatmul.f32.gmra.mxu3 %v507_v5  ;;  %662 = vmatmul.f32.gmra.mxu2 %v507_v5  ;;  %v888_v5 = vld [vmem:[#allocation11 + $0x80] sm:$0xff] }
  0x96   : > { %915 = vmatpush.msrb.mxu0 %v880_v46  ;;  %980 = vmatpush.msrb.mxu1 %v896_v47 }
  0x98   : > { %916 = vmatpush.msrb.mxu0 %v879_v48  ;;  %981 = vmatpush.msrb.mxu1 %v895_v49 }
  0x99   : > { %570 = vmatmul.f32.gmra.mxu0 %v498_v12  ;;  %635 = vmatmul.f32.gmra.mxu1 %v498_v12 }
  0x9a   : > { %917 = vmatpush.msrb.mxu0 %v878_v52  ;;  %982 = vmatpush.msrb.mxu1 %v894_v53 }
  0x9c   : > { %918 = vmatpush.msrb.mxu0 %v877_v54  ;;  %983 = vmatpush.msrb.mxu1 %v893_v55 }
  0x9d   : > { %600 = vmatmul.f32.gmra.mxu3 %v508_v7  ;;  %665 = vmatmul.f32.gmra.mxu2 %v508_v7 }
  0x9e   : > { %919 = vmatpush.msrb.mxu0 %v876_v57  ;;  %984 = vmatpush.msrb.mxu1 %v892_v58 }
  0xa0   : > { %920 = vmatpush.msrb.mxu0 %v875_v59  ;;  %985 = vmatpush.msrb.mxu1 %v891_v60 }
  0xa1   : > { %573 = vmatmul.f32.gmra.mxu0 %v499_v14  ;;  %638 = vmatmul.f32.gmra.mxu1 %v499_v14 }
  0xa2   : > { %921 = vmatpush.msrb.mxu0 %v874_v63  ;;  %986 = vmatpush.msrb.mxu1 %v890_v0 }
  0xa4   : > { %922 = vmatpush.msrb.mxu0 %v873_v2  ;;  %987 = vmatpush.msrb.mxu1 %v889_v3 }
  0xa5   : > { %603 = vmatmul.f32.gmra.mxu3 %v509_v9  ;;  %668 = vmatmul.f32.gmra.mxu2 %v509_v9 }
  0xa6   : > { %923 = vmatpush.msrb.mxu0 %v872_v4  ;;  %988 = vmatpush.msrb.mxu1 %v888_v5 }
  0xa9   : > { %576 = vmatmul.f32.gmra.mxu0 %v500_v16  ;;  %641 = vmatmul.f32.gmra.mxu1 %v500_v16 }
  0xad   : > { %688 = vmatmul.f32.vlgmr.msrb.gmra.mxu2 %v446_v11  ;;  %753 = vmatmul.f32.vlgmr.msrb.gmra.mxu3 %v446_v11 }
  0xb1   : > { %579 = vmatmul.f32.gmra.mxu0 %v501_v18  ;;  %644 = vmatmul.f32.gmra.mxu1 %v501_v18  ;;  %v802_v18 = vld [vmem:[%s2019_s4] sm:$0x3] }
  0xb5   : > { %691 = vmatmul.f32.gmra.mxu2 %v447_v13  ;;  %756 = vmatmul.f32.gmra.mxu3 %v447_v13  ;;  %v461_v13 = vld [vmem:[%s1808_s19 + $0x78] sm:$0xff]  ;;  %s1539_s19 = scalar_lea.hbm %s1538_s25, 1 }
  0xb6   : > { %p1540_p1 = scmp.ne.s32.totalorder %s1538_s25, %s1539_s19  ;;  %p1545_p10 = scmp.lt.s32.totalorder %s1543_s15, %s1539_s19 }
  0xb8   : > { %p1541_p4 = pnand %p1540_p1, %p1749_p7  ;;  %p1546_p2 = por %p1545_p10, %p1544_p9 }
  0xb9   : > { %582 = vmatmul.f32.gmra.mxu0 %v502_v20  ;;  %647 = vmatmul.f32.gmra.mxu1 %v502_v20  ;;  %v1894_v20 = vperm.slane %v802_v18, 1 }
  0xba   : > { %p1542_p8 = pneg %p1541_p4 }
  0xbc   : > { %p1547_p11 = pnand %p1546_p2, %p1542_p8 }
  0xbd   : > { %694 = vmatmul.f32.gmra.mxu2 %v448_v15  ;;  %759 = vmatmul.f32.gmra.mxu3 %v448_v15 }
  0xc5   : > { %697 = vmatmul.f32.gmra.mxu2 %v449_v17  ;;  %762 = vmatmul.f32.gmra.mxu3 %v449_v17 }
  0xcd   : > { %700 = vmatmul.f32.gmra.mxu2 %v450_v19  ;;  %765 = vmatmul.f32.gmra.mxu3 %v450_v19  ;;  %v1892_v19 = vperm.slane %v802_v18, 0 }
  0xd5   : > { %703 = vmatmul.f32.gmra.mxu2 %v451_v21  ;;  %768 = vmatmul.f32.gmra.mxu3 %v451_v21 }
  0xdd   : > { %706 = vmatmul.f32.gmra.mxu2 %v452_v22  ;;  %771 = vmatmul.f32.gmra.mxu3 %v452_v22 }
  0xe5   : > { %709 = vmatmul.f32.gmra.mxu2 %v453_v23  ;;  %774 = vmatmul.f32.gmra.mxu3 %v453_v23 }
  0xed   : > { %712 = vmatmul.f32.gmra.mxu2 %v454_v24  ;;  %777 = vmatmul.f32.gmra.mxu3 %v454_v24 }
  0xf5   : > { %715 = vmatmul.f32.gmra.mxu2 %v455_v25  ;;  %780 = vmatmul.f32.gmra.mxu3 %v455_v25 }
  0xf6   : > { %v559_v9 = vpop.f32.mrf.mxu0  ;;  %v624_v10 = vpop.f32.mrf.mxu1 }
  0xf8   : > { %v1855_v28 = vpop.f32.mrf.mxu3  ;;  %v1857_v29 = vpop.f32.mrf.mxu2 }
  0xfd   : > { %718 = vmatmul.f32.gmra.mxu2 %v456_v34  ;;  %783 = vmatmul.f32.gmra.mxu3 %v456_v34 }
  0xfe   : > { %v562_v14 = vpop.f32.mrf.mxu0  ;;  %v627_v15 = vpop.f32.mrf.mxu1 }
 0x100   : > { %v1860_v39 = vpop.f32.mrf.mxu3  ;;  %v1862_v40 = vpop.f32.mrf.mxu2 }
 0x105   : > { %721 = vmatmul.f32.gmra.mxu2 %v457_v45  ;;  %786 = vmatmul.f32.gmra.mxu3 %v457_v45 }
 0x106   : > { %v565_v25 = vpop.f32.mrf.mxu0  ;;  %v630_v26 = vpop.f32.mrf.mxu1 }
 0x108   : > { %v1865_v50 = vpop.f32.mrf.mxu3  ;;  %v1867_v51 = vpop.f32.mrf.mxu2 }
 0x10d   : > { %724 = vmatmul.f32.gmra.mxu2 %v458_v56  ;;  %789 = vmatmul.f32.gmra.mxu3 %v458_v56 }
 0x10e   : > { %v568_v41 = vpop.f32.mrf.mxu0  ;;  %v633_v42 = vpop.f32.mrf.mxu1 }
 0x110   : > { %v1870_v61 = vpop.f32.mrf.mxu3  ;;  %v1872_v62 = vpop.f32.mrf.mxu2 }
 0x115   : > { %727 = vmatmul.f32.gmra.mxu2 %v459_v1  ;;  %792 = vmatmul.f32.gmra.mxu3 %v459_v1 }
 0x116   : > { %v571_v55 = vpop.f32.mrf.mxu0  ;;  %v636_v56 = vpop.f32.mrf.mxu1 }
 0x118   : > { %v1875_v6 = vpop.f32.mrf.mxu3  ;;  %v1877_v7 = vpop.f32.mrf.mxu2 }
 0x11d   : > { %730 = vmatmul.f32.gmra.mxu2 %v460_v8  ;;  %795 = vmatmul.f32.gmra.mxu3 %v460_v8 }
 0x11e   : > { %v574_v3 = vpop.f32.mrf.mxu0  ;;  %v639_v4 = vpop.f32.mrf.mxu1 }
 0x120   : > { %v1880_v11 = vpop.f32.mrf.mxu3  ;;  %v1882_v12 = vpop.f32.mrf.mxu2 }
 0x125   : > { %733 = vmatmul.f32.gmra.mxu2 %v461_v13  ;;  %798 = vmatmul.f32.gmra.mxu3 %v461_v13 }
 0x128   : > { %v1885_v16 = vpop.f32.mrf.mxu3  ;;  %v1887_v17 = vpop.f32.mrf.mxu2 }
 0x130   : > { %v689_v21 = vpop.f32.mrf.mxu2  ;;  %v754_v22 = vpop.f32.mrf.mxu3 }
 0x131   : > { %v690_v23 = vadd.f32 %v689_v21, %v559_v9  ;;  %v755_v24 = vadd.f32 %v754_v22, %v624_v10 }
 0x133   : > { %v808_v27 = vadd.f32 %v1892_v19, %v690_v23  ;;  %v809_v30 = vadd.f32 %v1894_v20, %v755_v24 }
 0x135   : > { %v840_v31 = vmax.f32 %v808_v27, 0.0  ;;  %v841_v32 = vmax.f32 %v809_v30, 0.0 }
 0x137   : > { %924 = vmatmul.f32.vlgmr.msrb.gmra.mxu0 %v840_v31  ;;  %989 = vmatmul.f32.vlgmr.msrb.gmra.mxu1 %v841_v32 }
 0x138   : > { %v692_v33 = vpop.f32.mrf.mxu2  ;;  %v757_v34 = vpop.f32.mrf.mxu3 }
 0x139   : > { %v693_v35 = vadd.f32 %v692_v33, %v562_v14  ;;  %v758_v36 = vadd.f32 %v757_v34, %v627_v15 }
 0x13b   : > { %v810_v37 = vadd.f32 %v1892_v19, %v693_v35  ;;  %v811_v38 = vadd.f32 %v1894_v20, %v758_v36 }
 0x13d   : > { %v842_v43 = vmax.f32 %v810_v37, 0.0  ;;  %v843_v44 = vmax.f32 %v811_v38, 0.0 }
 0x13f   : > { %927 = vmatmul.f32.gmra.mxu0 %v842_v43  ;;  %992 = vmatmul.f32.gmra.mxu1 %v843_v44 }
 0x140   : > { %v695_v45 = vpop.f32.mrf.mxu2  ;;  %v760_v46 = vpop.f32.mrf.mxu3 }
 0x141   : > { %v696_v47 = vadd.f32 %v695_v45, %v565_v25  ;;  %v761_v48 = vadd.f32 %v760_v46, %v630_v26  ;;  %v577_v25 = vpop.f32.mrf.mxu0  ;;  %v642_v26 = vpop.f32.mrf.mxu1 }
 0x143   : > { %v812_v49 = vadd.f32 %v1892_v19, %v696_v47  ;;  %v813_v52 = vadd.f32 %v1894_v20, %v761_v48 }
 0x145   : > { %v844_v53 = vmax.f32 %v812_v49, 0.0  ;;  %v845_v54 = vmax.f32 %v813_v52, 0.0 }
 0x147   : > { %930 = vmatmul.f32.gmra.mxu0 %v844_v53  ;;  %995 = vmatmul.f32.gmra.mxu1 %v845_v54 }
 0x148   : > { %v698_v57 = vpop.f32.mrf.mxu2  ;;  %v763_v58 = vpop.f32.mrf.mxu3 }
 0x149   : > { %v699_v59 = vadd.f32 %v698_v57, %v568_v41  ;;  %v764_v60 = vadd.f32 %v763_v58, %v633_v42  ;;  %v580_v41 = vpop.f32.mrf.mxu0  ;;  %v645_v42 = vpop.f32.mrf.mxu1 }
 0x14b   : > { %v814_v63 = vadd.f32 %v1892_v19, %v699_v59  ;;  %v815_v0 = vadd.f32 %v1894_v20, %v764_v60 }
 0x14d   : > { %v846_v1 = vmax.f32 %v814_v63, 0.0  ;;  %v847_v2 = vmax.f32 %v815_v0, 0.0 }
 0x14f   : > { %933 = vmatmul.f32.gmra.mxu0 %v846_v1  ;;  %998 = vmatmul.f32.gmra.mxu1 %v847_v2 }
 0x150   : > { %v701_v5 = vpop.f32.mrf.mxu2  ;;  %v766_v8 = vpop.f32.mrf.mxu3 }
 0x151   : > { %v702_v9 = vadd.f32 %v701_v5, %v571_v55  ;;  %v767_v10 = vadd.f32 %v766_v8, %v636_v56  ;;  %v583_v55 = vpop.f32.mrf.mxu0  ;;  %v648_v56 = vpop.f32.mrf.mxu1 }
 0x153   : > { %v816_v13 = vadd.f32 %v1892_v19, %v702_v9  ;;  %v817_v14 = vadd.f32 %v1894_v20, %v767_v10 }
 0x155   : > { %v848_v15 = vmax.f32 %v816_v13, 0.0  ;;  %v849_v18 = vmax.f32 %v817_v14, 0.0 }
 0x157   : > { %936 = vmatmul.f32.gmra.mxu0 %v848_v15  ;;  %1001 = vmatmul.f32.gmra.mxu1 %v849_v18 }
 0x158   : > { %v704_v21 = vpop.f32.mrf.mxu2  ;;  %v769_v22 = vpop.f32.mrf.mxu3 }
 0x159   : > { %v705_v23 = vadd.f32 %v704_v21, %v574_v3  ;;  %v770_v24 = vadd.f32 %v769_v22, %v639_v4 }
 0x15b   : > { %v818_v27 = vadd.f32 %v1892_v19, %v705_v23  ;;  %v819_v30 = vadd.f32 %v1894_v20, %v770_v24 }
 0x15d   : > { %v850_v31 = vmax.f32 %v818_v27, 0.0  ;;  %v851_v32 = vmax.f32 %v819_v30, 0.0 }
 0x15f   : > { %939 = vmatmul.f32.gmra.mxu0 %v850_v31  ;;  %1004 = vmatmul.f32.gmra.mxu1 %v851_v32 }
 0x160   : > { %v707_v33 = vpop.f32.mrf.mxu2  ;;  %v772_v34 = vpop.f32.mrf.mxu3 }
 0x161   : > { %v708_v35 = vadd.f32 %v707_v33, %v577_v25  ;;  %v773_v36 = vadd.f32 %v772_v34, %v642_v26 }
 0x163   : > { %v820_v37 = vadd.f32 %v1892_v19, %v708_v35  ;;  %v821_v38 = vadd.f32 %v1894_v20, %v773_v36 }
 0x165   : > { %v852_v43 = vmax.f32 %v820_v37, 0.0  ;;  %v853_v44 = vmax.f32 %v821_v38, 0.0 }
 0x167   : > { %942 = vmatmul.f32.gmra.mxu0 %v852_v43  ;;  %1007 = vmatmul.f32.gmra.mxu1 %v853_v44 }
 0x168   : > { %v710_v45 = vpop.f32.mrf.mxu2  ;;  %v775_v46 = vpop.f32.mrf.mxu3 }
 0x169   : > { %v711_v47 = vadd.f32 %v710_v45, %v580_v41  ;;  %v776_v48 = vadd.f32 %v775_v46, %v645_v42 }
 0x16b   : > { %v822_v49 = vadd.f32 %v1892_v19, %v711_v47  ;;  %v823_v52 = vadd.f32 %v1894_v20, %v776_v48 }
 0x16d   : > { %v854_v53 = vmax.f32 %v822_v49, 0.0  ;;  %v855_v54 = vmax.f32 %v823_v52, 0.0 }
 0x16f   : > { %945 = vmatmul.f32.gmra.mxu0 %v854_v53  ;;  %1010 = vmatmul.f32.gmra.mxu1 %v855_v54 }
 0x170   : > { %v713_v57 = vpop.f32.mrf.mxu2  ;;  %v778_v58 = vpop.f32.mrf.mxu3 }
 0x171   : > { %v714_v59 = vadd.f32 %v713_v57, %v583_v55  ;;  %v779_v60 = vadd.f32 %v778_v58, %v648_v56 }
 0x173   : > { %v824_v63 = vadd.f32 %v1892_v19, %v714_v59  ;;  %v825_v0 = vadd.f32 %v1894_v20, %v779_v60 }
 0x175   : > { %v856_v1 = vmax.f32 %v824_v63, 0.0  ;;  %v857_v2 = vmax.f32 %v825_v0, 0.0  ;;  %v1945_v63 = vld [vmem:[%s2021_s6] ss:$0 sm:$0xff] }
 0x177   : > { %948 = vmatmul.f32.gmra.mxu0 %v856_v1  ;;  %1013 = vmatmul.f32.gmra.mxu1 %v857_v2 }
 0x178   : > { %v716_v3 = vpop.f32.mrf.mxu2  ;;  %v781_v4 = vpop.f32.mrf.mxu3 }
 0x179   : > { %v717_v5 = vadd.f32 %v716_v3, %v1855_v28  ;;  %v782_v8 = vadd.f32 %v781_v4, %v1857_v29 }
 0x17b   : > { %v826_v9 = vadd.f32 %v1892_v19, %v717_v5  ;;  %v827_v10 = vadd.f32 %v1894_v20, %v782_v8 }
 0x17d   : > { %v858_v13 = vmax.f32 %v826_v9, 0.0  ;;  %v859_v14 = vmax.f32 %v827_v10, 0.0 }
 0x17f   : > { %951 = vmatmul.f32.gmra.mxu0 %v858_v13  ;;  %1016 = vmatmul.f32.gmra.mxu1 %v859_v14 }
 0x180   : > { %v719_v15 = vpop.f32.mrf.mxu2  ;;  %v784_v18 = vpop.f32.mrf.mxu3 }
 0x181   : > { %v720_v21 = vadd.f32 %v719_v15, %v1860_v39  ;;  %v785_v22 = vadd.f32 %v784_v18, %v1862_v40 }
 0x183   : > { %v828_v23 = vadd.f32 %v1892_v19, %v720_v21  ;;  %v829_v28 = vadd.f32 %v1894_v20, %v785_v22 }
 0x185   : > { %v860_v24 = vmax.f32 %v828_v23, 0.0  ;;  %v861_v29 = vmax.f32 %v829_v28, 0.0 }
 0x187   : > { %954 = vmatmul.f32.gmra.mxu0 %v860_v24  ;;  %1019 = vmatmul.f32.gmra.mxu1 %v861_v29 }
 0x188   : > { %v722_v25 = vpop.f32.mrf.mxu2  ;;  %v787_v26 = vpop.f32.mrf.mxu3 }
 0x189   : > { %v723_v27 = vadd.f32 %v722_v25, %v1865_v50  ;;  %v788_v30 = vadd.f32 %v787_v26, %v1867_v51 }
 0x18b   : > { %v830_v31 = vadd.f32 %v1892_v19, %v723_v27  ;;  %v831_v39 = vadd.f32 %v1894_v20, %v788_v30 }
 0x18d   : > { %v862_v32 = vmax.f32 %v830_v31, 0.0  ;;  %v863_v40 = vmax.f32 %v831_v39, 0.0 }
 0x18f   : > { %957 = vmatmul.f32.gmra.mxu0 %v862_v32  ;;  %1022 = vmatmul.f32.gmra.mxu1 %v863_v40 }
 0x190   : > { %v725_v33 = vpop.f32.mrf.mxu2  ;;  %v790_v34 = vpop.f32.mrf.mxu3 }
 0x191   : > { %v726_v35 = vadd.f32 %v725_v33, %v1870_v61  ;;  %v791_v36 = vadd.f32 %v790_v34, %v1872_v62 }
 0x193   : > { %v832_v37 = vadd.f32 %v1892_v19, %v726_v35  ;;  %v833_v50 = vadd.f32 %v1894_v20, %v791_v36 }
 0x195   : > { %v864_v38 = vmax.f32 %v832_v37, 0.0  ;;  %v865_v51 = vmax.f32 %v833_v50, 0.0 }
 0x197   : > { %960 = vmatmul.f32.gmra.mxu0 %v864_v38  ;;  %1025 = vmatmul.f32.gmra.mxu1 %v865_v51 }
 0x198   : > { %v728_v41 = vpop.f32.mrf.mxu2  ;;  %v793_v42 = vpop.f32.mrf.mxu3 }
 0x199   : > { %v729_v43 = vadd.f32 %v728_v41, %v1875_v6  ;;  %v794_v44 = vadd.f32 %v793_v42, %v1877_v7 }
 0x19b   : > { %v834_v45 = vadd.f32 %v1892_v19, %v729_v43  ;;  %v835_v61 = vadd.f32 %v1894_v20, %v794_v44 }
 0x19d   : > { %v866_v46 = vmax.f32 %v834_v45, 0.0  ;;  %v867_v62 = vmax.f32 %v835_v61, 0.0 }
 0x19f   : > { %963 = vmatmul.f32.gmra.mxu0 %v866_v46  ;;  %1028 = vmatmul.f32.gmra.mxu1 %v867_v62 }
 0x1a0   : > { %v731_v47 = vpop.f32.mrf.mxu2  ;;  %v796_v48 = vpop.f32.mrf.mxu3 }
 0x1a1   : > { %v732_v49 = vadd.f32 %v731_v47, %v1880_v11  ;;  %v797_v52 = vadd.f32 %v796_v48, %v1882_v12 }
 0x1a3   : > { %v836_v53 = vadd.f32 %v1892_v19, %v732_v49  ;;  %v837_v6 = vadd.f32 %v1894_v20, %v797_v52 }
 0x1a5   : > { %v868_v54 = vmax.f32 %v836_v53, 0.0  ;;  %v869_v7 = vmax.f32 %v837_v6, 0.0 }
 0x1a7   : > { %966 = vmatmul.f32.gmra.mxu0 %v868_v54  ;;  %1031 = vmatmul.f32.gmra.mxu1 %v869_v7 }
 0x1a8   : > { %v734_v55 = vpop.f32.mrf.mxu2  ;;  %v799_v56 = vpop.f32.mrf.mxu3 }
 0x1a9   : > { %v735_v57 = vadd.f32 %v734_v55, %v1885_v16  ;;  %v800_v58 = vadd.f32 %v799_v56, %v1887_v17 }
 0x1ab   : > { %v838_v59 = vadd.f32 %v1892_v19, %v735_v57  ;;  %v839_v11 = vadd.f32 %v1894_v20, %v800_v58 }
 0x1ad   : > { %v870_v60 = vmax.f32 %v838_v59, 0.0  ;;  %v871_v12 = vmax.f32 %v839_v11, 0.0 }
 0x1af   : > { %969 = vmatmul.f32.gmra.mxu0 %v870_v60  ;;  %1034 = vmatmul.f32.gmra.mxu1 %v871_v12 }
 0x1b4   : > { %v925_v0 = vpop.f32.mrf.mxu0  ;;  %v990_v1 = vpop.f32.mrf.mxu1 }
 0x1b5   : > { %v926_v2 = vadd.f32 %v1945_v63, %v925_v0 }
 0x1b7   : > { %v1948_v16 = vadd.f32 %v990_v1, %v926_v2 }
 0x1bc   : > { %v928_v17 = vpop.f32.mrf.mxu0  ;;  %v993_v3 = vpop.f32.mrf.mxu1 }
 0x1bd   : > { %v929_v19 = vadd.f32 %v1945_v63, %v928_v17 }
 0x1bf   : > { %v1951_v20 = vadd.f32 %v993_v3, %v929_v19 }
 0x1c4   : > { %v931_v4 = vpop.f32.mrf.mxu0  ;;  %v996_v5 = vpop.f32.mrf.mxu1 }
 0x1c5   : > { %v932_v8 = vadd.f32 %v1945_v63, %v931_v4 }
 0x1c7   : > { %v1954_v9 = vadd.f32 %v996_v5, %v932_v8 }
 0x1cc   : > { %v934_v10 = vpop.f32.mrf.mxu0  ;;  %v999_v13 = vpop.f32.mrf.mxu1 }
 0x1cd   : > { %v935_v14 = vadd.f32 %v1945_v63, %v934_v10 }
 0x1cf   : > { %v1957_v15 = vadd.f32 %v999_v13, %v935_v14 }
 0x1d4   : > { %v937_v18 = vpop.f32.mrf.mxu0  ;;  %v1002_v21 = vpop.f32.mrf.mxu1 }
 0x1d5   : > { %v938_v22 = vadd.f32 %v1945_v63, %v937_v18  ;;  %v1041_v18 = vmax.f32 %v1957_v15, 0.0 }
 0x1d7   : > { %v1960_v23 = vadd.f32 %v1002_v21, %v938_v22  ;;  %v1040_v21 = vmax.f32 %v1954_v9, 0.0  ;;  %v1039_v22 = vmax.f32 %v1951_v20, 0.0 }
 0x1dc   : > { %v940_v28 = vpop.f32.mrf.mxu0  ;;  %v1005_v24 = vpop.f32.mrf.mxu1 }
 0x1dd   : > { %v941_v29 = vadd.f32 %v1945_v63, %v940_v28  ;;  %v1038_v28 = vmax.f32 %v1948_v16, 0.0 }
 0x1df   : > { %v1006_v25 = vadd.f32 %v1005_v24, %v941_v29  ;;  %v1054_v24 = vld [vmem:[%s2022_s7] sm:$0x1] }
 0x1e1   : > { %v1043_v14 = vmax.f32 %v1006_v25, 0.0 }
 0x1e4   : > { %v943_v26 = vpop.f32.mrf.mxu0  ;;  %v1008_v27 = vpop.f32.mrf.mxu1 }
 0x1e5   : > { %v944_v30 = vadd.f32 %v1945_v63, %v943_v26 }
 0x1e7   : > { %v1009_v31 = vadd.f32 %v1008_v27, %v944_v30 }
 0x1e9   : > { %v1044_v13 = vmax.f32 %v1009_v31, 0.0 }
 0x1ec   : > { %v946_v39 = vpop.f32.mrf.mxu0  ;;  %v1011_v32 = vpop.f32.mrf.mxu1 }
 0x1ed   : > { %v947_v40 = vadd.f32 %v1945_v63, %v946_v39 }
 0x1ef   : > { %v1012_v33 = vadd.f32 %v1011_v32, %v947_v40 }
 0x1f1   : > { %v1045_v10 = vmax.f32 %v1012_v33, 0.0 }
 0x1f4   : > { %v949_v34 = vpop.f32.mrf.mxu0  ;;  %v1014_v35 = vpop.f32.mrf.mxu1 }
 0x1f5   : > { %v950_v36 = vadd.f32 %v1945_v63, %v949_v34 }
 0x1f7   : > { %v1015_v37 = vadd.f32 %v1014_v35, %v950_v36 }
 0x1f9   : > { %v1046_v8 = vmax.f32 %v1015_v37, 0.0 }
 0x1fc   : > { %v952_v50 = vpop.f32.mrf.mxu0  ;;  %v1017_v38 = vpop.f32.mrf.mxu1 }
 0x1fd   : > { %v953_v51 = vadd.f32 %v1945_v63, %v952_v50 }
 0x1ff   : > { %v1018_v41 = vadd.f32 %v1017_v38, %v953_v51 }
 0x201   : > { %v1047_v5 = vmax.f32 %v1018_v41, 0.0 }
 0x204   : > { %v955_v42 = vpop.f32.mrf.mxu0  ;;  %v1020_v43 = vpop.f32.mrf.mxu1 }
 0x205   : > { %v956_v1 = vadd.f32 %v1945_v63, %v955_v42 }
 0x207   : > { %v1021_v3 = vadd.f32 %v1020_v43, %v956_v1 }
 0x209   : > { %v1048_v4 = vmax.f32 %v1021_v3, 0.0 }
 0x20c   : > { %v958_v44 = vpop.f32.mrf.mxu0  ;;  %v1023_v45 = vpop.f32.mrf.mxu1 }
 0x20d   : > { %v959_v60 = vadd.f32 %v1945_v63, %v958_v44 }
 0x20f   : > { %v1024_v2 = vadd.f32 %v1023_v45, %v959_v60 }
 0x211   : > { %v1049_v19 = vmax.f32 %v1024_v2, 0.0 }
 0x214   : > { %v961_v61 = vpop.f32.mrf.mxu0  ;;  %v1026_v46 = vpop.f32.mrf.mxu1 }
 0x215   : > { %v962_v58 = vadd.f32 %v1945_v63, %v961_v61 }
 0x217   : > { %v1027_v12 = vadd.f32 %v1026_v46, %v962_v58 }
 0x219   : > { %v1050_v17 = vmax.f32 %v1027_v12, 0.0 }
 0x21c   : > { %v964_v62 = vpop.f32.mrf.mxu0  ;;  %v1029_v47 = vpop.f32.mrf.mxu1 }
 0x21d   : > { %v965_v55 = vadd.f32 %v1945_v63, %v964_v62 }
 0x21f   : > { %v1030_v59 = vadd.f32 %v1029_v47, %v965_v55 }
 0x221   : > { %v1051_v0 = vmax.f32 %v1030_v59, 0.0 }
 0x224   : > { %v967_v48 = vpop.f32.mrf.mxu0  ;;  %v1032_v49 = vpop.f32.mrf.mxu1 }
 0x225   : > { %v968_v53 = vadd.f32 %v1945_v63, %v967_v48 }
 0x227   : > { %v1033_v56 = vadd.f32 %v1032_v49, %v968_v53 }
 0x229   : > { %v1052_v11 = vmax.f32 %v1033_v56, 0.0 }
 0x22c   : > { %v970_v52 = vpop.f32.mrf.mxu0  ;;  %v1035_v54 = vpop.f32.mrf.mxu1 }
 0x22d   : > { %v971_v6 = vadd.f32 %v1945_v63, %v970_v52  ;;  %v1042_v63 = vmax.f32 %v1960_v23, 0.0  ;;  %v1056_v23 = vstv %s1055_s2 }
 0x22f   : > { %v1036_v7 = vadd.f32 %v1035_v54, %v971_v6 }
 0x231   : > { %v1053_v57 = vmax.f32 %v1036_v7, 0.0 }
 0x233   : > { %1057 = vmatpush.xpose.msra.mxu2 %v1053_v57 }
 0x237   : > { %1058 = vmatpush.xpose.msra.mxu2 %v1052_v11 }
 0x23b   : > { %1059 = vmatpush.xpose.msra.mxu2 %v1051_v0 }
 0x23f   : > { %1060 = vmatpush.xpose.msra.mxu2 %v1050_v17 }
 0x243   : > { %1061 = vmatpush.xpose.msra.mxu2 %v1049_v19 }
 0x247   : > { %1062 = vmatpush.xpose.msra.mxu2 %v1048_v4 }
 0x24b   : > { %1063 = vmatpush.xpose.msra.mxu2 %v1047_v5 }
 0x24f   : > { %1064 = vmatpush.xpose.msra.mxu2 %v1046_v8 }
 0x253   : > { %1065 = vmatpush.xpose.msra.mxu2 %v1045_v10 }
 0x257   : > { %1066 = vmatpush.xpose.msra.mxu2 %v1044_v13 }
 0x25b   : > { %1067 = vmatpush.xpose.msra.mxu2 %v1043_v14 }
 0x25f   : > { %1068 = vmatpush.xpose.msra.mxu2 %v1042_v63 }
 0x263   : > { %1069 = vmatpush.xpose.msra.mxu2 %v1041_v18 }
 0x267   : > { %1070 = vmatpush.xpose.msra.mxu2 %v1040_v21 }
 0x26b   : > { %1071 = vmatpush.xpose.msra.mxu2 %v1039_v22 }
 0x26f   : > { %1072 = vmatpush.xpose.msra.mxu2 %v1038_v28 }
 0x272   : > { %1073 = vmatmul.f32.vlgmr.msra.gmra.mxu2 %v1054_v24 }
 0x2f5   : > { %v1074_v15 = vpop.f32.mrf.mxu2 }
 0x2f6   : > { %v1075_v29 = vadd.f32 %v1074_v15, %v1056_v23 }
 0x2f8   : > { %v1245_v25 = vmul.f32 -1.442695, %v1075_v29 }
 0x2fa   : > { %1369 = vpow2.f32 %v1245_v25 }
 0x300   : > { %v1370_v9 = vpop.eup %1369 }
 0x301   : > { %v1080_v26 = vadd.f32 1.0, %v1370_v9 }
 0x303   : > { %1371 = vrcp.f32 %v1080_v26  ;;  %v1092_v30 = vand.u32 2147483648, %v1080_v26  ;;  %v1090_v39 = vand.u32 2147483647, %v1080_v26  ;;  %vm1086_vm1 = vweird.f32 %v1080_v26 }
 0x305   : > { %v1093_v40 = vor.u32 1.1754944e-38, %v1092_v30  ;;  %vm1091_vm3 = vcmp.eq.f32.partialorder %v1090_v39, 8.507059e+37 }
 0x309   : > { %v1372_v20 = vpop.eup %1371 }
 0x30a   : > { %v1082_v27 = vmul.f32 %v1372_v20, %v1080_v26  ;;  %vm1087_vm0 = vweird.f32 %v1372_v20 }
 0x30b   : > { %vm1088_vm2 = vmor %vm1086_vm1, %vm1087_vm0 }
 0x30c   : > { %v1083_v16 = vsub.f32 1.0, %v1082_v27 }
 0x30e   : > { %v1084_v31 = vmul.f32 %v1372_v20, %v1083_v16 }
 0x310   : > { %v1085_v32 = vadd.f32 %v1372_v20, %v1084_v31 }
 0x312   : > { %v1089_v33 = vsel %vm1088_vm2, %v1372_v20, %v1085_v32 }
 0x313   : > { %v1094_v34 = vsel %vm1091_vm3, %v1093_v40, %v1089_v33 }
 0x314   : > { %1096 = vst [vmem:[%s443_s29] sm:$0x1] %v1094_v34 }
 0x315   : > { %1550 = shalt.err (!%p1547_p11)
}
 0x316   : > { %1298 = dma.vmem_to_hbm [thread:$0]  (%p1749_p7), %s1109_s10, 16, %s1111_s0, %s1098_s8  }
 0x317 PF: > { %s1122_s20 = sand.u32 1, %s1589_s11   ;;  %p2048_p12 = scmp.ge.s32.totalorder %s1601_s14, 2 }
 0x318   : > { %s1123_s3 = scalar_lea.sflag [#allocation5], %s1122_s20 }
 0x319   : > { %p1318_p13 = pnand %p2048_p12, %p1698_p6 }
 0x31b   : > { %p1319_p0 = pneg %p1318_p13 }
 0x31d   : > { %1584 = dma.done.wait (%p1319_p0), %s1123_s3, 16  }
 0x31e   : > { %1586 = vsyncadd (%p1319_p0), %s1123_s3, 4294967280  ;;  %s2049_s5 = sld [smem:[#allocation18_spill]]  ;;  %p27_p3 = scmp.ge.s32.totalorder %s1735_s26, 4  }
 0x31f   : > { %s2050_s13 = sld [smem:[#allocation19_spill]]  ;;  %s2051_s11 = smov %s1593_s12 }
 0x320   : > { %s2053_s14 = smov %s1735_s26  ;;  %29 = sbr.rel (!%p27_p3) target bundleno = 14 (0xe), region = 126 }
 0x324   : > { %s2052_s12 = smov %s2049_s5 }
 0x325   :  { %1128 = vsyncpa [#allocation4], 1 }
 0x326   :  { %1130 = vsyncpa [#allocation4 + $0x1], 1 }
 0x327   :  { %1131 = vsyncpa [#allocation7], 1 }
 0x328   :  { %1133 = vsyncpa [#allocation7 + $0x1], 1 }
 0x329   :  { %1134 = vsyncpa [#allocation10], 1 }
 0x32a   :  { %1135 = vsyncpa [#allocation5], 1 }
 0x32b   :  { %1137 = vsyncpa [#allocation5 + $0x1], 1 }

</bundles_post_ra>
